<compile_context>
chip_gen: v7x
topology: tpu7x:2x2x1
jax: 0.10.0
libtpu: 0.0.40
codegen_flags: <defaults>
</compile_context>

<pallas_src>
import numpy as np

import jax
import jax.numpy as jnp
from jax.experimental import pallas as pl
from jax.experimental.pallas import tpu as pltpu

LATENT = 16


# ----------------------------------------------------------------------------
# Host-side, one-time weight re-layout (pure NumPy -- NOT on the jitted path)
# ----------------------------------------------------------------------------
def _conv_band_np(w, b, L, in_stride, n):
    """Embed Conv1d(k=3, padding='same') into an (n, n) banded matrix.

    Input activation lanes : t * in_stride + ci   (t in [0,L), ci in [0,cin))
    Output activation lanes: t * cout + co        (t in [0,L), co in [0,cout))
    Rows for dead ("garbage") input lanes stay zero, which also implements the
    post-pool compaction of the previous layer.
    """
    cout, cin, ktaps = w.shape
    Wm = np.zeros((n, n), np.float32)
    ci = np.arange(cin)
    co = np.arange(cout)
    ts = np.arange(L)
    for tap in range(ktaps):
        src = ts + tap - 1                      # 'same' padding for k=3
        ok = (src >= 0) & (src < L)
        t_v, s_v = ts[ok], src[ok]
        shape = (t_v.size, cin, cout)
        rows = np.broadcast_to(
            s_v[:, None, None] * in_stride + ci[None, :, None], shape).ravel()
        cols = np.broadcast_to(
            t_v[:, None, None] * cout + co[None, None, :], shape).ravel()
        vals = np.broadcast_to(w[:, :, tap].T[None, :, :], shape).ravel()
        np.add.at(Wm, (rows, cols), vals)
    return Wm, np.tile(b, L)                    # bias lane-vector, length n


def _deconv_block_np(w, b, P, m):
    """Embed ConvTranspose1d(k=2, stride=2) into an (m, m) block matrix.

    Input lanes : p * cin + ci            (p in [0,P))
    Output lanes: (2p + k) * cout + co    (k in {0,1})  -> already interleaved.
    """
    cin, cout, ktaps = w.shape
    Dm = np.zeros((m, m), np.float32)
    ci = np.arange(cin)
    co = np.arange(cout)
    ps = np.arange(P)
    for k in range(ktaps):
        shape = (P, cin, cout)
        rows = np.broadcast_to(
            ps[:, None, None] * cin + ci[None, :, None], shape).ravel()
        cols = np.broadcast_to(
            (2 * ps[:, None, None] + k) * cout + co[None, None, :], shape).ravel()
        vals = np.broadcast_to(w[None, :, :, k], shape).ravel()
        np.add.at(Dm, (rows, cols), vals)
    return Dm, np.tile(b, 2 * P)


def _enc_embed_np(we, Lf, n, lat):
    """enc1 weight (lat, 32*Lf) -> (n, lat): torch channel-major flatten and
    dead-lane zeroing folded into the weight (last pooled act lanes = 64*r+c)."""
    r = np.arange(Lf)
    c = np.arange(32)
    rows = (64 * r[:, None] + c[None, :]).ravel()
    feat = (c[None, :] * Lf + r[:, None]).ravel()
    E = np.zeros((n, lat), np.float32)
    E[rows, :] = we.T[feat, :]
    return E


def _dec_embed_np(wd, bd, Lf, lat, m):
    """dec1 weight (32*Lf, lat) -> (lat, m) emitting the decoder lane layout
    (lane = position*32 + channel), matching torch's .view(-1, 32, Lf)."""
    l = np.arange(Lf)
    c = np.arange(32)
    cols = (l[:, None] * 32 + c[None, :]).ravel()
    feat = (c[None, :] * Lf + l[:, None]).ravel()
    D = np.zeros((lat, m), np.float32)
    D[:, cols] = wd[feat, :].T
    bm = np.zeros((m,), np.float32)
    bm[cols] = bd[feat]
    return D, bm


def prepare_params(params, intensity_count):
    """One-time re-layout of the PyTorch-shaped parameters into the kernel's
    banded / block / fused matrices.  Call once at parameter-load time."""
    assert intensity_count % 32 == 0
    ic = intensity_count
    n = 2 * ic
    Lf = ic // 32
    out_lanes = -(-ic // 128) * 128             # lane-dense output width (>=128)

    f = lambda a: np.asarray(a, np.float32)

    # Encoder conv banded weights.
    cw_list, cb_list = [], []
    L, stride = ic, 1
    for w, b in params["convs"]:
        Wm, bm = _conv_band_np(f(w), f(b), L=L, in_stride=stride, n=n)
        cw_list.append(Wm)
        cb_list.append(bm)
        stride = 2 * w.shape[0]                 # next layer's input lane stride
        L //= 2
    cw0 = cw_list[0][:ic, :]                    # rows >= ic are structurally 0
    cw = np.stack(cw_list[1:])                  # (4, n, n)
    cb = np.stack(cb_list)                      # (5, n)

    # Bottleneck: fuse enc1 @ dec1 (no activation in between, z not returned).
    we, be = params["enc1"]
    ew = _enc_embed_np(f(we), Lf, n, LATENT)                    # (n, LATENT)
    wd, bd = params["dec1"]
    dw, db = _dec_embed_np(f(wd), f(bd), Lf, LATENT, ic)        # (LATENT, ic)
    w_ed = ew @ dw                                              # (n, ic)
    b_ed = f(be) @ dw + db                                      # (ic,)

    # Decoder block weights; last one zero-padded to `out_lanes` columns.
    tw_list, tb_list = [], []
    P = Lf
    for w, b in params["deconvs"]:
        Dm, bm = _deconv_block_np(f(w), f(b), P=P, m=ic)
        tw_list.append(Dm)
        tb_list.append(bm)
        P *= 2
    tw = np.stack(tw_list[:4])                                  # (4, ic, ic)
    tb = np.stack(tb_list[:4])                                  # (4, ic)
    tw5 = np.zeros((ic, out_lanes), np.float32)
    tw5[:, :ic] = tw_list[4]
    tb5 = np.zeros((1, out_lanes), np.float32)
    tb5[0, :ic] = tb_list[4]

    d = jnp.asarray
    return dict(
        cw0=d(cw0), cw=d(cw), cb=d(cb),
        w_ed=d(w_ed), b_ed=d(b_ed[None, :]),
        tw=d(tw), tb=d(tb), tw5=d(tw5), tb5=d(tb5),
    )


# ----------------------------------------------------------------------------
# The fused kernel
# ----------------------------------------------------------------------------
def _convae_kernel(x_ref, cw0_ref, cw_ref, cb_ref, wed_ref, bed_ref,
                   tw_ref, tb_ref, tw5_ref, tb5_ref, o_ref):
    f32 = jnp.float32
    n = cw_ref.shape[-1]                            # 2 * intensity_count

    # ---- encoder: 5 x [banded-conv matmul + bias + tanh + roll/max pool] ----
    a = x_ref[...]                                  # (TB, ic) unpadded input
    for i in range(5):
        w = cw0_ref[...] if i == 0 else cw_ref[i - 1]
        cout = 2 ** (i + 1)                         # 2, 4, 8, 16, 32
        y = jnp.dot(a, w, preferred_element_type=f32)
        y = jnp.tanh(y + cb_ref[i:i + 1, :])
        # MaxPool1d(2): partner of lane t*cout+co is lane (t+1)*cout+co.
        # Garbage on odd-position / wrapped lanes is neutralised by the zero
        # rows of the next layer's banded weight (load-bearing).
        a = jnp.maximum(y, pltpu.roll(y, shift=n - cout, axis=1))

    # ---- bottleneck: enc1@dec1 pre-fused on the host, then tanh ----
    h = jnp.tanh(jnp.dot(a, wed_ref[...], preferred_element_type=f32)
                 + bed_ref[...])

    # ---- decoder: 4 x [block ConvTranspose matmul + tanh] ----
    for i in range(4):
        h = jnp.tanh(jnp.dot(h, tw_ref[i], preferred_element_type=f32)
                     + tb_ref[i:i + 1, :])

    # Final ConvTranspose (no tanh); weight padded to >=128 output lanes so the
    # store is lane-dense (unmasked vst).  Output lanes 0..ic-1 are the signal
    # in time order.
    o_ref[...] = (jnp.dot(h, tw5_ref[...], preferred_element_type=f32)
                  + tb5_ref[...])


def _pick_batch_tile(B):
    """Largest convenient batch tile that divides B; falls back to the whole
    batch for small / odd batches (exactly the B=2 demo case)."""
    for tb in (512, 256, 128, 64, 32, 16, 8):
        if B % tb == 0:
            return tb
    return B


# ----------------------------------------------------------------------------
# Forward pass wrapper (single pallas_call on the hot path)
# ----------------------------------------------------------------------------
def conv_ae_forward(prep, x_ncl):
    n, ic = prep["w_ed"].shape                      # (2*ic, ic)
    out_lanes = prep["tw5"].shape[1]
    B = x_ncl.shape[0]
    x2d = x_ncl.reshape(B, ic)                      # free reshape, no pad

    TB = _pick_batch_tile(B)
    nb = B // TB

    out = pl.pallas_call(
        _convae_kernel,
        out_shape=jax.ShapeDtypeStruct((B, out_lanes), jnp.float32),
        grid=(nb,),
        in_specs=[
            pl.BlockSpec((TB, ic), lambda b: (b, 0)),          # x (batch-tiled)
            pl.BlockSpec((ic, n), lambda b: (0, 0)),           # conv1 (trimmed)
            pl.BlockSpec((4, n, n), lambda b: (0, 0, 0)),      # conv2..5
            pl.BlockSpec((5, n), lambda b: (0, 0)),            # conv biases
            pl.BlockSpec((n, ic), lambda b: (0, 0)),           # enc1@dec1
            pl.BlockSpec((1, ic), lambda b: (0, 0)),
            pl.BlockSpec((4, ic, ic), lambda b: (0, 0, 0)),    # deconv1..4
            pl.BlockSpec((4, ic), lambda b: (0, 0)),
            pl.BlockSpec((ic, out_lanes), lambda b: (0, 0)),   # deconv5 (padded)
            pl.BlockSpec((1, out_lanes), lambda b: (0, 0)),
        ],
        out_specs=pl.BlockSpec((TB, out_lanes), lambda b: (b, 0)),
        compiler_params=pltpu.CompilerParams(
            # Batch tiles are independent -> shards across both TCs on v7x;
            # measured-neutral on single-TC v5e/v6e.
            dimension_semantics=("parallel",),
            # Plenty for ic=64 weights (<1 MiB) + batch-tiled activations;
            # stays under v7x's 64 MiB physical VMEM.
            vmem_limit_bytes=32 * 1024 * 1024,
        ),
    )(x2d, prep["cw0"], prep["cw"], prep["cb"], prep["w_ed"], prep["b_ed"],
      prep["tw"], prep["tb"], prep["tw5"], prep["tb5"])

    if out_lanes != ic:
        out = out[:, :ic]                           # drop lane padding
    return out.reshape(B, 1, ic)                    # back to NCL


# ----------------------------------------------------------------------------
# Parameters (deterministic synthetic init, PyTorch weight shapes)
# ----------------------------------------------------------------------------
def init_params(key, intensity_count):
    enc_channels = [(1, 2), (2, 4), (4, 8), (8, 16), (16, 32)]
    dec_channels = [(32, 16), (16, 8), (8, 4), (4, 2), (2, 1)]
    feat = 32 * (intensity_count // 2 ** 5)
    keys = iter(jax.random.split(key, 24))
    scale = 0.1
    params = {}
    params["convs"] = [
        (scale * jax.random.normal(next(keys), (cout, cin, 3), jnp.float32),
         scale * jax.random.normal(next(keys), (cout,), jnp.float32))
        for cin, cout in enc_channels
    ]
    params["enc1"] = (
        scale * jax.random.normal(next(keys), (LATENT, feat), jnp.float32),
        scale * jax.random.normal(next(keys), (LATENT,), jnp.float32),
    )
    params["dec1"] = (
        scale * jax.random.normal(next(keys), (feat, LATENT), jnp.float32),
        scale * jax.random.normal(next(keys), (feat,), jnp.float32),
    )
    params["deconvs"] = [
        (scale * jax.random.normal(next(keys), (cin, cout, 2), jnp.float32),
         scale * jax.random.normal(next(keys), (cout,), jnp.float32))
        for cin, cout in dec_channels
    ]
    return params


# ----------------------------------------------------------------------------
# Pure-JAX reference mirroring the PyTorch module exactly (NCL layout)
# ----------------------------------------------------------------------------
def ref_forward(params, x_ncl, intensity_count):
    B = x_ncl.shape[0]
    h = x_ncl
    for w, b in params["convs"]:
        L = h.shape[-1]
        xp = jnp.pad(h, ((0, 0), (0, 0), (1, 1)))
        y = sum(jnp.einsum("bil,oi->bol", xp[:, :, k:k + L], w[:, :, k])
                for k in range(3))
        y = jnp.tanh(y + b[None, :, None])
        h = y.reshape(B, y.shape[1], L // 2, 2).max(axis=-1)
    h = h.reshape(B, -1)
    we, be = params["enc1"]
    z = h @ we.T + be
    wd, bd = params["dec1"]
    h = jnp.tanh(z @ wd.T + bd)
    h = h.reshape(B, 32, intensity_count // 2 ** 5)
    for i, (w, b) in enumerate(params["deconvs"]):
        t = jnp.einsum("bil,iok->bolk", h, w)        # (B, Cout, L, 2)
        y = t.reshape(B, t.shape[1], -1) + b[None, :, None]
        h = jnp.tanh(y) if i < 4 else y
    return h


if __name__ == "__main__":
    intensity_count = 64     # must be divisible by 2**5
    batch = 2

    key = jax.random.PRNGKey(0)
    pkey, xkey = jax.random.split(key)
    params = init_params(pkey, intensity_count)
    x = jax.random.normal(xkey, (batch, 1, intensity_count), jnp.float32)

    # One-time host-side weight re-layout (outside the jitted per-call path).
    prep = prepare_params(params, intensity_count)

    fwd = jax.jit(conv_ae_forward)
    out = jax.block_until_ready(fwd(prep, x))
    ref = ref_forward(params, x, intensity_count)

    assert out.shape == (batch, 1, intensity_count), out.shape
    max_err = float(jnp.max(jnp.abs(out - ref)))
    assert jnp.allclose(out, ref, atol=1e-4, rtol=1e-4), max_err
    print("KERNEL_OK")
</pallas_src>

<mosaic_0001>
module attributes {stable_mosaic.version = 11 : i64} {
  func.func @_convae_kernel(%arg0: i32, %arg1: memref<2x64xf32, #tpu.memory_space<vmem>>, %arg2: memref<64x128xf32, #tpu.memory_space<vmem>>, %arg3: memref<4x128x128xf32, #tpu.memory_space<vmem>>, %arg4: memref<5x128xf32, #tpu.memory_space<vmem>>, %arg5: memref<128x64xf32, #tpu.memory_space<vmem>>, %arg6: memref<1x64xf32, #tpu.memory_space<vmem>>, %arg7: memref<4x64x64xf32, #tpu.memory_space<vmem>>, %arg8: memref<4x64xf32, #tpu.memory_space<vmem>>, %arg9: memref<64x128xf32, #tpu.memory_space<vmem>>, %arg10: memref<1x128xf32, #tpu.memory_space<vmem>>, %arg11: memref<2x128xf32, #tpu.memory_space<vmem>>) attributes {dimension_semantics = [#tpu.dimension_semantics<parallel>], iteration_bounds = array<i64: 1>, scalar_prefetch = 0 : i64, scratch_operands = 0 : i64, tpu.core_type = #tpu.core_type<tc>, window_params = [{transform_indices = @transform_0, window_bounds = array<i64: 2, 64>}, {pipeline_mode = #tpu.pipeline_mode<synchronous>, transform_indices = @transform_1, window_bounds = array<i64: 64, 128>}, {pipeline_mode = #tpu.pipeline_mode<synchronous>, transform_indices = @transform_2, window_bounds = array<i64: 4, 128, 128>}, {pipeline_mode = #tpu.pipeline_mode<synchronous>, transform_indices = @transform_3, window_bounds = array<i64: 5, 128>}, {pipeline_mode = #tpu.pipeline_mode<synchronous>, transform_indices = @transform_4, window_bounds = array<i64: 128, 64>}, {pipeline_mode = #tpu.pipeline_mode<synchronous>, transform_indices = @transform_5, window_bounds = array<i64: 1, 64>}, {pipeline_mode = #tpu.pipeline_mode<synchronous>, transform_indices = @transform_6, window_bounds = array<i64: 4, 64, 64>}, {pipeline_mode = #tpu.pipeline_mode<synchronous>, transform_indices = @transform_7, window_bounds = array<i64: 4, 64>}, {pipeline_mode = #tpu.pipeline_mode<synchronous>, transform_indices = @transform_8, window_bounds = array<i64: 64, 128>}, {pipeline_mode = #tpu.pipeline_mode<synchronous>, transform_indices = @transform_9, window_bounds = array<i64: 1, 128>}, {transform_indices = @transform_10, window_bounds = array<i64: 2, 128>}]} {
    %c0 = arith.constant 0 : index
    %c0_0 = arith.constant 0 : index
    %0 = vector.load %arg1[%c0, %c0_0] : memref<2x64xf32, #tpu.memory_space<vmem>>, vector<2x64xf32>
    %c0_1 = arith.constant 0 : index
    %c0_2 = arith.constant 0 : index
    %1 = vector.load %arg2[%c0_1, %c0_2] : memref<64x128xf32, #tpu.memory_space<vmem>>, vector<64x128xf32>
    %cst = arith.constant dense<0.000000e+00> : vector<2x128xf32>
    %2 = tpu.matmul %0, %1, %cst {dimension_numbers = #tpu.dot_dimension_numbers<[1], [0], [0], [1], [0, 0, 1, 1], [], []>} : vector<2x64xf32>, vector<64x128xf32>, vector<2x128xf32> -> vector<2x128xf32>
    %c0_3 = arith.constant 0 : index
    %c0_4 = arith.constant 0 : index
    %3 = vector.load %arg4[%c0_3, %c0_4] : memref<5x128xf32, #tpu.memory_space<vmem>>, vector<1x128xf32>
    %4 = vector.broadcast %3 : vector<1x128xf32> to vector<2x128xf32>
    %5 = arith.addf %2, %4 : vector<2x128xf32>
    %6 = math.tanh %5 : vector<2x128xf32>
    %c126_i32 = arith.constant 126 : i32
    %7 = tpu.dynamic_rotate %6 by %c126_i32 dim 1 : vector<2x128xf32>, i32 -> vector<2x128xf32>
    %8 = arith.maximumf %6, %7 : vector<2x128xf32>
    %c0_5 = arith.constant 0 : index
    %c0_6 = arith.constant 0 : index
    %c0_7 = arith.constant 0 : index
    %9 = vector.load %arg3[%c0_5, %c0_6, %c0_7] : memref<4x128x128xf32, #tpu.memory_space<vmem>>, vector<1x128x128xf32>
    %10 = vector.shape_cast %9 : vector<1x128x128xf32> to vector<128x128xf32>
    %cst_8 = arith.constant dense<0.000000e+00> : vector<2x128xf32>
    %11 = tpu.matmul %8, %10, %cst_8 {dimension_numbers = #tpu.dot_dimension_numbers<[1], [0], [0], [1], [0, 0, 1, 1], [], []>} : vector<2x128xf32>, vector<128x128xf32>, vector<2x128xf32> -> vector<2x128xf32>
    %c1 = arith.constant 1 : index
    %c0_9 = arith.constant 0 : index
    %12 = vector.load %arg4[%c1, %c0_9] : memref<5x128xf32, #tpu.memory_space<vmem>>, vector<1x128xf32>
    %13 = vector.broadcast %12 : vector<1x128xf32> to vector<2x128xf32>
    %14 = arith.addf %11, %13 : vector<2x128xf32>
    %15 = math.tanh %14 : vector<2x128xf32>
    %c124_i32 = arith.constant 124 : i32
    %16 = tpu.dynamic_rotate %15 by %c124_i32 dim 1 : vector<2x128xf32>, i32 -> vector<2x128xf32>
    %17 = arith.maximumf %15, %16 : vector<2x128xf32>
    %c1_10 = arith.constant 1 : index
    %c0_11 = arith.constant 0 : index
    %c0_12 = arith.constant 0 : index
    %18 = vector.load %arg3[%c1_10, %c0_11, %c0_12] : memref<4x128x128xf32, #tpu.memory_space<vmem>>, vector<1x128x128xf32>
    %19 = vector.shape_cast %18 : vector<1x128x128xf32> to vector<128x128xf32>
    %cst_13 = arith.constant dense<0.000000e+00> : vector<2x128xf32>
    %20 = tpu.matmul %17, %19, %cst_13 {dimension_numbers = #tpu.dot_dimension_numbers<[1], [0], [0], [1], [0, 0, 1, 1], [], []>} : vector<2x128xf32>, vector<128x128xf32>, vector<2x128xf32> -> vector<2x128xf32>
    %c2 = arith.constant 2 : index
    %c0_14 = arith.constant 0 : index
    %21 = vector.load %arg4[%c2, %c0_14] : memref<5x128xf32, #tpu.memory_space<vmem>>, vector<1x128xf32>
    %22 = vector.broadcast %21 : vector<1x128xf32> to vector<2x128xf32>
    %23 = arith.addf %20, %22 : vector<2x128xf32>
    %24 = math.tanh %23 : vector<2x128xf32>
    %c120_i32 = arith.constant 120 : i32
    %25 = tpu.dynamic_rotate %24 by %c120_i32 dim 1 : vector<2x128xf32>, i32 -> vector<2x128xf32>
    %26 = arith.maximumf %24, %25 : vector<2x128xf32>
    %c2_15 = arith.constant 2 : index
    %c0_16 = arith.constant 0 : index
    %c0_17 = arith.constant 0 : index
    %27 = vector.load %arg3[%c2_15, %c0_16, %c0_17] : memref<4x128x128xf32, #tpu.memory_space<vmem>>, vector<1x128x128xf32>
    %28 = vector.shape_cast %27 : vector<1x128x128xf32> to vector<128x128xf32>
    %cst_18 = arith.constant dense<0.000000e+00> : vector<2x128xf32>
    %29 = tpu.matmul %26, %28, %cst_18 {dimension_numbers = #tpu.dot_dimension_numbers<[1], [0], [0], [1], [0, 0, 1, 1], [], []>} : vector<2x128xf32>, vector<128x128xf32>, vector<2x128xf32> -> vector<2x128xf32>
    %c3 = arith.constant 3 : index
    %c0_19 = arith.constant 0 : index
    %30 = vector.load %arg4[%c3, %c0_19] : memref<5x128xf32, #tpu.memory_space<vmem>>, vector<1x128xf32>
    %31 = vector.broadcast %30 : vector<1x128xf32> to vector<2x128xf32>
    %32 = arith.addf %29, %31 : vector<2x128xf32>
    %33 = math.tanh %32 : vector<2x128xf32>
    %c112_i32 = arith.constant 112 : i32
    %34 = tpu.dynamic_rotate %33 by %c112_i32 dim 1 : vector<2x128xf32>, i32 -> vector<2x128xf32>
    %35 = arith.maximumf %33, %34 : vector<2x128xf32>
    %c3_20 = arith.constant 3 : index
    %c0_21 = arith.constant 0 : index
    %c0_22 = arith.constant 0 : index
    %36 = vector.load %arg3[%c3_20, %c0_21, %c0_22] : memref<4x128x128xf32, #tpu.memory_space<vmem>>, vector<1x128x128xf32>
    %37 = vector.shape_cast %36 : vector<1x128x128xf32> to vector<128x128xf32>
    %cst_23 = arith.constant dense<0.000000e+00> : vector<2x128xf32>
    %38 = tpu.matmul %35, %37, %cst_23 {dimension_numbers = #tpu.dot_dimension_numbers<[1], [0], [0], [1], [0, 0, 1, 1], [], []>} : vector<2x128xf32>, vector<128x128xf32>, vector<2x128xf32> -> vector<2x128xf32>
    %c4 = arith.constant 4 : index
    %c0_24 = arith.constant 0 : index
    %39 = vector.load %arg4[%c4, %c0_24] : memref<5x128xf32, #tpu.memory_space<vmem>>, vector<1x128xf32>
    %40 = vector.broadcast %39 : vector<1x128xf32> to vector<2x128xf32>
    %41 = arith.addf %38, %40 : vector<2x128xf32>
    %42 = math.tanh %41 : vector<2x128xf32>
    %c96_i32 = arith.constant 96 : i32
    %43 = tpu.dynamic_rotate %42 by %c96_i32 dim 1 : vector<2x128xf32>, i32 -> vector<2x128xf32>
    %44 = arith.maximumf %42, %43 : vector<2x128xf32>
    %c0_25 = arith.constant 0 : index
    %c0_26 = arith.constant 0 : index
    %45 = vector.load %arg5[%c0_25, %c0_26] : memref<128x64xf32, #tpu.memory_space<vmem>>, vector<128x64xf32>
    %cst_27 = arith.constant dense<0.000000e+00> : vector<2x64xf32>
    %46 = tpu.matmul %44, %45, %cst_27 {dimension_numbers = #tpu.dot_dimension_numbers<[1], [0], [0], [1], [0, 0, 1, 1], [], []>} : vector<2x128xf32>, vector<128x64xf32>, vector<2x64xf32> -> vector<2x64xf32>
    %c0_28 = arith.constant 0 : index
    %c0_29 = arith.constant 0 : index
    %47 = vector.load %arg6[%c0_28, %c0_29] : memref<1x64xf32, #tpu.memory_space<vmem>>, vector<1x64xf32>
    %48 = vector.broadcast %47 : vector<1x64xf32> to vector<2x64xf32>
    %49 = arith.addf %46, %48 : vector<2x64xf32>
    %50 = math.tanh %49 : vector<2x64xf32>
    %c0_30 = arith.constant 0 : index
    %c0_31 = arith.constant 0 : index
    %c0_32 = arith.constant 0 : index
    %51 = vector.load %arg7[%c0_30, %c0_31, %c0_32] : memref<4x64x64xf32, #tpu.memory_space<vmem>>, vector<1x64x64xf32>
    %52 = vector.shape_cast %51 : vector<1x64x64xf32> to vector<64x64xf32>
    %cst_33 = arith.constant dense<0.000000e+00> : vector<2x64xf32>
    %53 = tpu.matmul %50, %52, %cst_33 {dimension_numbers = #tpu.dot_dimension_numbers<[1], [0], [0], [1], [0, 0, 1, 1], [], []>} : vector<2x64xf32>, vector<64x64xf32>, vector<2x64xf32> -> vector<2x64xf32>
    %c0_34 = arith.constant 0 : index
    %c0_35 = arith.constant 0 : index
    %54 = vector.load %arg8[%c0_34, %c0_35] : memref<4x64xf32, #tpu.memory_space<vmem>>, vector<1x64xf32>
    %55 = vector.broadcast %54 : vector<1x64xf32> to vector<2x64xf32>
    %56 = arith.addf %53, %55 : vector<2x64xf32>
    %57 = math.tanh %56 : vector<2x64xf32>
    %c1_36 = arith.constant 1 : index
    %c0_37 = arith.constant 0 : index
    %c0_38 = arith.constant 0 : index
    %58 = vector.load %arg7[%c1_36, %c0_37, %c0_38] : memref<4x64x64xf32, #tpu.memory_space<vmem>>, vector<1x64x64xf32>
    %59 = vector.shape_cast %58 : vector<1x64x64xf32> to vector<64x64xf32>
    %cst_39 = arith.constant dense<0.000000e+00> : vector<2x64xf32>
    %60 = tpu.matmul %57, %59, %cst_39 {dimension_numbers = #tpu.dot_dimension_numbers<[1], [0], [0], [1], [0, 0, 1, 1], [], []>} : vector<2x64xf32>, vector<64x64xf32>, vector<2x64xf32> -> vector<2x64xf32>
    %c1_40 = arith.constant 1 : index
    %c0_41 = arith.constant 0 : index
    %61 = vector.load %arg8[%c1_40, %c0_41] : memref<4x64xf32, #tpu.memory_space<vmem>>, vector<1x64xf32>
    %62 = vector.broadcast %61 : vector<1x64xf32> to vector<2x64xf32>
    %63 = arith.addf %60, %62 : vector<2x64xf32>
    %64 = math.tanh %63 : vector<2x64xf32>
    %c2_42 = arith.constant 2 : index
    %c0_43 = arith.constant 0 : index
    %c0_44 = arith.constant 0 : index
    %65 = vector.load %arg7[%c2_42, %c0_43, %c0_44] : memref<4x64x64xf32, #tpu.memory_space<vmem>>, vector<1x64x64xf32>
    %66 = vector.shape_cast %65 : vector<1x64x64xf32> to vector<64x64xf32>
    %cst_45 = arith.constant dense<0.000000e+00> : vector<2x64xf32>
    %67 = tpu.matmul %64, %66, %cst_45 {dimension_numbers = #tpu.dot_dimension_numbers<[1], [0], [0], [1], [0, 0, 1, 1], [], []>} : vector<2x64xf32>, vector<64x64xf32>, vector<2x64xf32> -> vector<2x64xf32>
    %c2_46 = arith.constant 2 : index
    %c0_47 = arith.constant 0 : index
    %68 = vector.load %arg8[%c2_46, %c0_47] : memref<4x64xf32, #tpu.memory_space<vmem>>, vector<1x64xf32>
    %69 = vector.broadcast %68 : vector<1x64xf32> to vector<2x64xf32>
    %70 = arith.addf %67, %69 : vector<2x64xf32>
    %71 = math.tanh %70 : vector<2x64xf32>
    %c3_48 = arith.constant 3 : index
    %c0_49 = arith.constant 0 : index
    %c0_50 = arith.constant 0 : index
    %72 = vector.load %arg7[%c3_48, %c0_49, %c0_50] : memref<4x64x64xf32, #tpu.memory_space<vmem>>, vector<1x64x64xf32>
    %73 = vector.shape_cast %72 : vector<1x64x64xf32> to vector<64x64xf32>
    %cst_51 = arith.constant dense<0.000000e+00> : vector<2x64xf32>
    %74 = tpu.matmul %71, %73, %cst_51 {dimension_numbers = #tpu.dot_dimension_numbers<[1], [0], [0], [1], [0, 0, 1, 1], [], []>} : vector<2x64xf32>, vector<64x64xf32>, vector<2x64xf32> -> vector<2x64xf32>
    %c3_52 = arith.constant 3 : index
    %c0_53 = arith.constant 0 : index
    %75 = vector.load %arg8[%c3_52, %c0_53] : memref<4x64xf32, #tpu.memory_space<vmem>>, vector<1x64xf32>
    %76 = vector.broadcast %75 : vector<1x64xf32> to vector<2x64xf32>
    %77 = arith.addf %74, %76 : vector<2x64xf32>
    %78 = math.tanh %77 : vector<2x64xf32>
    %c0_54 = arith.constant 0 : index
    %c0_55 = arith.constant 0 : index
    %79 = vector.load %arg9[%c0_54, %c0_55] : memref<64x128xf32, #tpu.memory_space<vmem>>, vector<64x128xf32>
    %cst_56 = arith.constant dense<0.000000e+00> : vector<2x128xf32>
    %80 = tpu.matmul %78, %79, %cst_56 {dimension_numbers = #tpu.dot_dimension_numbers<[1], [0], [0], [1], [0, 0, 1, 1], [], []>} : vector<2x64xf32>, vector<64x128xf32>, vector<2x128xf32> -> vector<2x128xf32>
    %c0_57 = arith.constant 0 : index
    %c0_58 = arith.constant 0 : index
    %81 = vector.load %arg10[%c0_57, %c0_58] : memref<1x128xf32, #tpu.memory_space<vmem>>, vector<1x128xf32>
    %82 = vector.broadcast %81 : vector<1x128xf32> to vector<2x128xf32>
    %83 = arith.addf %80, %82 : vector<2x128xf32>
    %c0_59 = arith.constant 0 : index
    %c0_60 = arith.constant 0 : index
    %84 = vector.load %arg11[%c0_59, %c0_60] : memref<2x128xf32, #tpu.memory_space<vmem>>, vector<2x128xf32>
    tpu.vector_store %arg11[%c0_59, %c0_60], %83 {strides = array<i32>} : memref<2x128xf32, #tpu.memory_space<vmem>>, vector<2x128xf32>,
    return
  }
  func.func @transform_0(%arg0: i32) -> (i32, i32) {
    %c0_i32 = arith.constant 0 : i32
    %c0_i32_0 = arith.constant 0 : i32
    return %arg0, %c0_i32 : i32, i32
  }
  func.func @transform_1(%arg0: i32) -> (i32, i32) {
    %c0_i32 = arith.constant 0 : i32
    %c0_i32_0 = arith.constant 0 : i32
    %c0_i32_1 = arith.constant 0 : i32
    return %c0_i32, %c0_i32_0 : i32, i32
  }
  func.func @transform_2(%arg0: i32) -> (i32, i32, i32) {
    %c0_i32 = arith.constant 0 : i32
    %c0_i32_0 = arith.constant 0 : i32
    %c0_i32_1 = arith.constant 0 : i32
    %c0_i32_2 = arith.constant 0 : i32
    return %c0_i32, %c0_i32_0, %c0_i32_1 : i32, i32, i32
  }
  func.func @transform_3(%arg0: i32) -> (i32, i32) {
    %c0_i32 = arith.constant 0 : i32
    %c0_i32_0 = arith.constant 0 : i32
    %c0_i32_1 = arith.constant 0 : i32
    return %c0_i32, %c0_i32_0 : i32, i32
  }
  func.func @transform_4(%arg0: i32) -> (i32, i32) {
    %c0_i32 = arith.constant 0 : i32
    %c0_i32_0 = arith.constant 0 : i32
    %c0_i32_1 = arith.constant 0 : i32
    return %c0_i32, %c0_i32_0 : i32, i32
  }
  func.func @transform_5(%arg0: i32) -> (i32, i32) {
    %c0_i32 = arith.constant 0 : i32
    %c0_i32_0 = arith.constant 0 : i32
    %c0_i32_1 = arith.constant 0 : i32
    return %c0_i32, %c0_i32_0 : i32, i32
  }
  func.func @transform_6(%arg0: i32) -> (i32, i32, i32) {
    %c0_i32 = arith.constant 0 : i32
    %c0_i32_0 = arith.constant 0 : i32
    %c0_i32_1 = arith.constant 0 : i32
    %c0_i32_2 = arith.constant 0 : i32
    return %c0_i32, %c0_i32_0, %c0_i32_1 : i32, i32, i32
  }
  func.func @transform_7(%arg0: i32) -> (i32, i32) {
    %c0_i32 = arith.constant 0 : i32
    %c0_i32_0 = arith.constant 0 : i32
    %c0_i32_1 = arith.constant 0 : i32
    return %c0_i32, %c0_i32_0 : i32, i32
  }
  func.func @transform_8(%arg0: i32) -> (i32, i32) {
    %c0_i32 = arith.constant 0 : i32
    %c0_i32_0 = arith.constant 0 : i32
    %c0_i32_1 = arith.constant 0 : i32
    return %c0_i32, %c0_i32_0 : i32, i32
  }
  func.func @transform_9(%arg0: i32) -> (i32, i32) {
    %c0_i32 = arith.constant 0 : i32
    %c0_i32_0 = arith.constant 0 : i32
    %c0_i32_1 = arith.constant 0 : i32
    return %c0_i32, %c0_i32_0 : i32, i32
  }
  func.func @transform_10(%arg0: i32) -> (i32, i32) {
    %c0_i32 = arith.constant 0 : i32
    %c0_i32_0 = arith.constant 0 : i32
    return %arg0, %c0_i32 : i32, i32
  }
}

</mosaic_0001>

<bundles_post_ra>
// kernel: conv_ae_forward.1
= control target key start
LH: loop header
LB: loop body
LE: loop exit
PB: predicated region body
PF: predicated region fallthrough
CT: control target
= control target key end

     0   :  { %15 = vsyncpa [#allocation3], 0  ;;  %s2159_s0 = inlined_call_operand.vmem [shape: f32[2,64], index: 0, kind: input, shape index: {}]   ;;  %s2160_s1 = inlined_call_operand.vmem [shape: f32[64,128], index: 1, kind: input, shape index: {}]   ;;  %s2161_s2 = inlined_call_operand.hbm [shape: f32[4,128,128], index: 2, kind: input, shape index: {}]   ;;  %s2162_s3 = inlined_call_operand.vmem [shape: f32[5,128], index: 3, kind: input, shape index: {}]   ;;  %s2163_s4 = inlined_call_operand.vmem [shape: f32[128,64], index: 4, kind: input, shape index: {}]   ;;  %s2164_s5 = inlined_call_operand.vmem [shape: f32[1,64], index: 5, kind: input, shape index: {}]   ;;  %s2165_s6 = inlined_call_operand.hbm [shape: f32[4,64,64], index: 6, kind: input, shape index: {}]   ;;  %s2166_s7 = inlined_call_operand.vmem [shape: f32[4,64], index: 7, kind: input, shape index: {}]   ;;  %s2167_s8 = inlined_call_operand.vmem [shape: f32[64,128], index: 8, kind: input, shape index: {}]   ;;  %s2168_s9 = inlined_call_operand.vmem [shape: f32[1,128], index: 9, kind: input, shape index: {}]   ;;  %s2169_s10 = inlined_call_operand.hbm [shape: f32[2,128], index: 10, kind: output, shape index: {}]  }
   0x1   :  { %16 = vsyncpa [#allocation6], 0 }
   0x2   :  { %17 = vsyncpa [#allocation4], 0  ;;  %s1831_s13 = smov [#allocation2]   ;;  %s1759_s17 = scalar_lea.hbm %s2161_s2, 8192 }
   0x3   :  { %s27_s14 = sshll.u32 %s1831_s13, 4  ;;  %p1760_p0 = scmp.ne.s32.totalorder %s2161_s2, %s1759_s17  ;;  %s28_s14 = int_to_ptr.vmem [resolvable:$true] %s27_s14 }
   0x4   :  { %p1763_p1 = scmp.lt.u32.totalorder %s1759_s17, %s2161_s2 }
   0x6   :  { %p1765_p2 = pnand %p1763_p1, %p1760_p0 }
   0x8   :  { %1768 = shalt.err (!%p1765_p2)
}
   0x9   :  { %s1769_s22 = scalar_lea.vmem %s28_s14, 8192  ;;  %p1774_p4 = scmp.lt.s32.totalorder %s28_s14, %s28_s14 }
   0xa   :  { %p1770_p3 = scmp.ne.s32.totalorder %s28_s14, %s1769_s22  ;;  %p1775_p5 = scmp.lt.s32.totalorder %s1769_s22, %s1769_s22 }
   0xc   :  { %p1776_p6 = por %p1775_p5, %p1774_p4 }
   0xe   :  { %p1777_p7 = pnand %p1776_p6, %p1770_p3 }
  0x10   :  { %1780 = shalt.err (!%p1777_p7)
}
  0x11   :  { %s1832_s23 = smov 128   ;;  %s1833_s24 = smov 8  }
  0x12   :  { %33 = dma.hbm_to_vmem [thread:$0]  %s2161_s2, 8192, %s28_s14, [#allocation3], %s1832_s23, %s1832_s23, %s1833_s24  }
  0x13   :  { %s1834_s27 = smov [#allocation5]   ;;  %s1781_s11 = scalar_lea.hbm %s2165_s6, 4096 }
  0x14   :  { %s45_s28 = sshll.u32 %s1834_s27, 4  ;;  %p1782_p8 = scmp.ne.s32.totalorder %s2165_s6, %s1781_s11  ;;  %s46_s28 = int_to_ptr.vmem [resolvable:$true] %s45_s28 }
  0x15   :  { %p1785_p9 = scmp.lt.u32.totalorder %s1781_s11, %s2165_s6 }
  0x17   :  { %p1787_p10 = pnand %p1785_p9, %p1782_p8 }
  0x19   :  { %1790 = shalt.err (!%p1787_p10)
}
  0x1a   :  { %s1791_s17 = scalar_lea.vmem %s46_s28, 4096  ;;  %p1796_p12 = scmp.lt.s32.totalorder %s46_s28, %s46_s28 }
  0x1b   :  { %p1792_p11 = scmp.ne.s32.totalorder %s46_s28, %s1791_s17  ;;  %p1797_p13 = scmp.lt.s32.totalorder %s1791_s17, %s1791_s17 }
  0x1d   :  { %p1798_p0 = por %p1797_p13, %p1796_p12 }
  0x1f   :  { %p1799_p1 = pnand %p1798_p0, %p1792_p11 }
  0x21   :  { %1802 = shalt.err (!%p1799_p1)
}
  0x22   :  { %51 = dma.hbm_to_vmem [thread:$0]  %s2165_s6, 4096, %s46_s28, [#allocation6], %s1832_s23, %s1832_s23, %s1833_s24  }
  0x23   :  { %1825 = dma.done.wait [#allocation3], 8192  }
  0x24   :  { %1826 = vsyncadd [#allocation3], 4294959104 }
  0x25   :  { %1827 = dma.done.wait [#allocation6], 4096  }
  0x26   :  { %1828 = vsyncadd [#allocation6], 4294963200  ;;  %v1835_v0 = vmov 0.0|0.0   ;;  %vm1836_vm0 = vmmov 0   ;;  %v1837_v1 = vmov 0.0   ;;  %v65_v2 = vld [vmem:[%s2160_s1] sm:$0xff] }
  0x27   :  { %1534 = vmatprep.subr.bf16.mxu0 %v1835_v0  ;;  %1261 = vmatprep.mubr.msk.f32.mxu0 %vm1836_vm0, %v1837_v1  ;;  %v66_v3 = vld [vmem:[%s2160_s1 + $0x8] sm:$0xff]  ;;  %v67_v4 = vld [vmem:[%s2160_s1 + $0x10] sm:$0xff]  ;;  %v68_v6 = vld [vmem:[%s2160_s1 + $0x18] sm:$0xff]  ;;  %vm78_vm1 = vcmask 523264   ;;  %s1838_s16 = smov 126   ;;  %s1839_s14 = smov 124  }
  0x28   :  { %1546 = vmatprep.subr.bf16.mxu1 %v1835_v0  ;;  %1296 = vmatprep.mubr.msk.f32.mxu1 %vm1836_vm0, %v1837_v1  ;;  %v1535_v5 = vpack.c.bf16 %v66_v3, %v65_v2  ;;  %v1538_v7 = vpack.c.bf16 %v68_v6, %v67_v4  ;;  %v69_v8 = vld [vmem:[%s2160_s1 + $0x20] sm:$0xff]  ;;  %v70_v9 = vld [vmem:[%s2160_s1 + $0x28] sm:$0xff]  ;;  %v71_v11 = vld [vmem:[%s2160_s1 + $0x30] sm:$0xff]  ;;  %s1840_s6 = smov 120   ;;  %s1841_s22 = smov 112  }
  0x29   :  { %v1541_v10 = vpack.c.bf16 %v70_v9, %v69_v8  ;;  %v72_v12 = vld [vmem:[%s2160_s1 + $0x38] sm:$0xff]  ;;  %v64_v14 = vld [vmem:[%s2159_s0] sm:$0x3]  ;;  %v157_v16 = vld [vmem:[#allocation2 + $0x8] sm:$0xff] }
  0x2a   :  { %1536 = vmatpush3.bf16.msra.mxu0 %v1535_v5  ;;  %v1544_v13 = vpack.c.bf16 %v72_v12, %v71_v11  ;;  %v156_v15 = vld [vmem:[#allocation2] sm:$0xff]  ;;  %v158_v17 = vld [vmem:[#allocation2 + $0x10] sm:$0xff]  ;;  %v159_v19 = vld [vmem:[#allocation2 + $0x18] sm:$0xff] }
  0x2b   :  { %1537 = vmatprep.subr.bf16.mxu0 %v1835_v0  ;;  %v1547_v18 = vpack.c.bf16 %v157_v16, %v156_v15  ;;  %v1550_v20 = vpack.c.bf16 %v159_v19, %v158_v17  ;;  %v160_v21 = vld [vmem:[#allocation2 + $0x20] sm:$0xff]  ;;  %v161_v22 = vld [vmem:[#allocation2 + $0x28] sm:$0xff]  ;;  %v162_v24 = vld [vmem:[#allocation2 + $0x30] sm:$0xff] }
  0x2c   :  { %v1553_v23 = vpack.c.bf16 %v161_v22, %v160_v21  ;;  %v163_v25 = vld [vmem:[#allocation2 + $0x38] sm:$0xff]  ;;  %v164_v27 = vld [vmem:[#allocation2 + $0x40] sm:$0xff]  ;;  %v165_v28 = vld [vmem:[#allocation2 + $0x48] sm:$0xff] }
  0x2d   :  { %1548 = vmatpush3.bf16.msra.mxu1 %v1547_v18  ;;  %v1556_v26 = vpack.c.bf16 %v163_v25, %v162_v24  ;;  %v1559_v29 = vpack.c.bf16 %v165_v28, %v164_v27  ;;  %v166_v30 = vld [vmem:[#allocation2 + $0x50] sm:$0xff]  ;;  %v167_v31 = vld [vmem:[#allocation2 + $0x58] sm:$0xff]  ;;  %v168_v33 = vld [vmem:[#allocation2 + $0x60] sm:$0xff] }
  0x2e   :  { %1539 = vmatpush3.bf16.msra.mxu0 %v1538_v7  ;;  %1549 = vmatprep.subr.bf16.mxu1 %v1835_v0  ;;  %v1562_v32 = vpack.c.bf16 %v167_v31, %v166_v30  ;;  %v169_v34 = vld [vmem:[#allocation2 + $0x68] sm:$0xff]  ;;  %v170_v36 = vld [vmem:[#allocation2 + $0x70] sm:$0xff]  ;;  %v171_v37 = vld [vmem:[#allocation2 + $0x78] sm:$0xff] }
  0x2f   :  { %1540 = vmatprep.subr.bf16.mxu0 %v1835_v0  ;;  %v1565_v35 = vpack.c.bf16 %v169_v34, %v168_v33  ;;  %v1568_v38 = vpack.c.bf16 %v171_v37, %v170_v36  ;;  %v1089_v39 = vld [vmem:[%s2162_s3] ss:$0 sm:$0xff]  ;;  %v253_v47 = vld [vmem:[#allocation2 + $0x88] sm:$0xff]  ;;  %v254_v48 = vld [vmem:[#allocation2 + $0x90] sm:$0xff] }
  0x30   :  { %v252_v46 = vld [vmem:[#allocation2 + $0x80] sm:$0xff]  ;;  %v255_v50 = vld [vmem:[#allocation2 + $0x98] sm:$0xff]  ;;  %v257_v53 = vld [vmem:[#allocation2 + $0xa8] sm:$0xff] }
  0x31   :  { %1551 = vmatpush3.bf16.msra.mxu1 %v1550_v20  ;;  %v1571_v49 = vpack.c.bf16 %v253_v47, %v252_v46  ;;  %v1574_v51 = vpack.c.bf16 %v255_v50, %v254_v48  ;;  %v256_v52 = vld [vmem:[#allocation2 + $0xa0] sm:$0xff]  ;;  %v258_v55 = vld [vmem:[#allocation2 + $0xb0] sm:$0xff]  ;;  %v259_v56 = vld [vmem:[#allocation2 + $0xb8] sm:$0xff] }
  0x32   :  { %1542 = vmatpush3.bf16.msra.mxu0 %v1541_v10  ;;  %1552 = vmatprep.subr.bf16.mxu1 %v1835_v0  ;;  %v1577_v54 = vpack.c.bf16 %v257_v53, %v256_v52  ;;  %v1580_v57 = vpack.c.bf16 %v259_v56, %v258_v55  ;;  %v260_v58 = vld [vmem:[#allocation2 + $0xc0] sm:$0xff]  ;;  %v261_v59 = vld [vmem:[#allocation2 + $0xc8] sm:$0xff]  ;;  %v262_v61 = vld [vmem:[#allocation2 + $0xd0] sm:$0xff] }
  0x33   :  { %1543 = vmatprep.subr.bf16.mxu0 %v1835_v0  ;;  %v1583_v60 = vpack.c.bf16 %v261_v59, %v260_v58  ;;  %v263_v62 = vld [vmem:[#allocation2 + $0xd8] sm:$0xff]  ;;  %v264_v2 = vld [vmem:[#allocation2 + $0xe0] sm:$0xff]  ;;  %v265_v3 = vld [vmem:[#allocation2 + $0xe8] sm:$0xff] }
  0x34   :  { %v1586_v63 = vpack.c.bf16 %v263_v62, %v262_v61  ;;  %v1589_v4 = vpack.c.bf16 %v265_v3, %v264_v2  ;;  %v266_v5 = vld [vmem:[#allocation2 + $0xf0] sm:$0xff]  ;;  %v267_v6 = vld [vmem:[#allocation2 + $0xf8] sm:$0xff]  ;;  %v1091_v8 = vld [vmem:[%s2162_s3 + $0x1] ss:$0 sm:$0xff] }
  0x35   :  { %1554 = vmatpush3.bf16.msra.mxu1 %v1553_v23  ;;  %v1592_v7 = vpack.c.bf16 %v267_v6, %v266_v5  ;;  %v348_v15 = vld [vmem:[#allocation2 + $0x100] sm:$0xff]  ;;  %v349_v16 = vld [vmem:[#allocation2 + $0x108] sm:$0xff]  ;;  %v350_v17 = vld [vmem:[#allocation2 + $0x110] sm:$0xff] }
  0x36   :  { %1545 = vmatpush3.bf16.msra.mxu0 %v1544_v13  ;;  %1555 = vmatprep.subr.bf16.mxu1 %v1835_v0  ;;  %v1595_v18 = vpack.c.bf16 %v349_v16, %v348_v15  ;;  %v351_v19 = vld [vmem:[#allocation2 + $0x118] sm:$0xff]  ;;  %v352_v21 = vld [vmem:[#allocation2 + $0x120] sm:$0xff]  ;;  %v353_v22 = vld [vmem:[#allocation2 + $0x128] sm:$0xff] }
  0x37   :  { %1570 = vmatprep.subr.bf16.mxu0 %v1835_v0  ;;  %v1598_v20 = vpack.c.bf16 %v351_v19, %v350_v17  ;;  %v1601_v23 = vpack.c.bf16 %v353_v22, %v352_v21  ;;  %v354_v24 = vld [vmem:[#allocation2 + $0x130] sm:$0xff]  ;;  %v355_v25 = vld [vmem:[#allocation2 + $0x138] sm:$0xff]  ;;  %v356_v27 = vld [vmem:[#allocation2 + $0x140] sm:$0xff] }
  0x38   :  { %v357_v28 = vld [vmem:[#allocation2 + $0x148] sm:$0xff]  ;;  %v358_v30 = vld [vmem:[#allocation2 + $0x150] sm:$0xff]  ;;  %v359_v31 = vld [vmem:[#allocation2 + $0x158] sm:$0xff] }
  0x39   :  { %1262 = vmatmul.mubr.msk.f32.vlgmr.msra.gmra.mrb[0].mxu0 %vm78_vm1, %v64_v14  ;;  %1557 = vmatpush3.bf16.msra.mxu1 %v1556_v26  ;;  %v1604_v26 = vpack.c.bf16 %v355_v25, %v354_v24  ;;  %v360_v33 = vld [vmem:[#allocation2 + $0x160] sm:$0xff]  ;;  %v361_v34 = vld [vmem:[#allocation2 + $0x168] sm:$0xff]  ;;  %v362_v36 = vld [vmem:[#allocation2 + $0x170] sm:$0xff] }
  0x3a   :  { %1331 = vmatprep.mubr.msk.f32.mxu0 %vm1836_vm0, %v1837_v1  ;;  %1558 = vmatprep.subr.bf16.mxu1 %v1835_v0  ;;  %v363_v37 = vld [vmem:[#allocation2 + $0x178] sm:$0xff]  ;;  %v444_v46 = vld [vmem:[#allocation2 + $0x180] sm:$0xff]  ;;  %v445_v47 = vld [vmem:[#allocation2 + $0x188] sm:$0xff] }
  0x3b   :  { %1572 = vmatpush3.bf16.msra.mxu0 %v1571_v49  ;;  %v446_v48 = vld [vmem:[#allocation2 + $0x190] sm:$0xff]  ;;  %v1619_v49 = vpack.c.bf16 %v445_v47, %v444_v46  ;;  %v447_v50 = vld [vmem:[#allocation2 + $0x198] sm:$0xff]  ;;  %v448_v52 = vld [vmem:[#allocation2 + $0x1a0] sm:$0xff] }
  0x3c   :  { %1573 = vmatprep.subr.bf16.mxu0 %v1835_v0  ;;  %v449_v53 = vld [vmem:[#allocation2 + $0x1a8] sm:$0xff]  ;;  %v450_v55 = vld [vmem:[#allocation2 + $0x1b0] sm:$0xff]  ;;  %v451_v56 = vld [vmem:[#allocation2 + $0x1b8] sm:$0xff] }
  0x3d   :  { %1560 = vmatpush3.bf16.msra.mxu1 %v1559_v29  ;;  %v1607_v29 = vpack.c.bf16 %v357_v28, %v356_v27  ;;  %v452_v58 = vld [vmem:[#allocation2 + $0x1c0] sm:$0xff]  ;;  %v453_v59 = vld [vmem:[#allocation2 + $0x1c8] sm:$0xff]  ;;  %v454_v61 = vld [vmem:[#allocation2 + $0x1d0] sm:$0xff] }
  0x3e   :  { %1561 = vmatprep.subr.bf16.mxu1 %v1835_v0  ;;  %v455_v62 = vld [vmem:[#allocation2 + $0x1d8] sm:$0xff]  ;;  %v456_v2 = vld [vmem:[#allocation2 + $0x1e0] sm:$0xff]  ;;  %v457_v3 = vld [vmem:[#allocation2 + $0x1e8] sm:$0xff] }
  0x3f   :  { %1575 = vmatpush3.bf16.msra.mxu0 %v1574_v51  ;;  %v1622_v51 = vpack.c.bf16 %v447_v50, %v446_v48  ;;  %v458_v5 = vld [vmem:[#allocation2 + $0x1f0] sm:$0xff]  ;;  %v459_v6 = vld [vmem:[#allocation2 + $0x1f8] sm:$0xff]  ;;  %v539_v15 = vld [vmem:[%s2163_s4] sm:$0xff] }
  0x40   :  { %1576 = vmatprep.subr.bf16.mxu0 %v1835_v0  ;;  %v540_v16 = vld [vmem:[%s2163_s4 + $0x8] sm:$0xff]  ;;  %v541_v17 = vld [vmem:[%s2163_s4 + $0x10] sm:$0xff]  ;;  %v542_v19 = vld [vmem:[%s2163_s4 + $0x18] sm:$0xff] }
  0x41   :  { %1563 = vmatpush3.bf16.msra.mxu1 %v1562_v32  ;;  %v1610_v32 = vpack.c.bf16 %v359_v31, %v358_v30  ;;  %v543_v21 = vld [vmem:[%s2163_s4 + $0x20] sm:$0xff]  ;;  %v544_v22 = vld [vmem:[%s2163_s4 + $0x28] sm:$0xff]  ;;  %v545_v24 = vld [vmem:[%s2163_s4 + $0x30] sm:$0xff] }
  0x42   :  { %1564 = vmatprep.subr.bf16.mxu1 %v1835_v0  ;;  %v546_v25 = vld [vmem:[%s2163_s4 + $0x38] sm:$0xff]  ;;  %v547_v27 = vld [vmem:[%s2163_s4 + $0x40] sm:$0xff]  ;;  %v548_v28 = vld [vmem:[%s2163_s4 + $0x48] sm:$0xff] }
  0x43   :  { %1578 = vmatpush3.bf16.msra.mxu0 %v1577_v54  ;;  %v1625_v54 = vpack.c.bf16 %v449_v53, %v448_v52  ;;  %v549_v30 = vld [vmem:[%s2163_s4 + $0x50] sm:$0xff]  ;;  %v550_v31 = vld [vmem:[%s2163_s4 + $0x58] sm:$0xff]  ;;  %v637_v52 = vld [vmem:[#allocation5 + $0x20] sm:$0xff] }
  0x44   :  { %1579 = vmatprep.subr.bf16.mxu0 %v1835_v0  ;;  %v636_v50 = vld [vmem:[#allocation5 + $0x18] sm:$0xff]  ;;  %v638_v53 = vld [vmem:[#allocation5 + $0x28] sm:$0xff] }
  0x45   :  { %1566 = vmatpush3.bf16.msra.mxu1 %v1565_v35  ;;  %v1613_v35 = vpack.c.bf16 %v361_v34, %v360_v33  ;;  %v551_v33 = vld [vmem:[%s2163_s4 + $0x60] sm:$0xff]  ;;  %v552_v34 = vld [vmem:[%s2163_s4 + $0x68] sm:$0xff] }
  0x46   :  { %1567 = vmatprep.subr.bf16.mxu1 %v1835_v0 }
  0x47   :  { %1581 = vmatpush3.bf16.msra.mxu0 %v1580_v57  ;;  %v1628_v57 = vpack.c.bf16 %v451_v56, %v450_v55  ;;  %v639_v55 = vld [vmem:[#allocation5 + $0x30] sm:$0xff]  ;;  %v640_v56 = vld [vmem:[#allocation5 + $0x38] sm:$0xff] }
  0x48   :  { %1582 = vmatprep.subr.bf16.mxu0 %v1835_v0 }
  0x49   :  { %1569 = vmatpush3.bf16.msra.mxu1 %v1568_v38  ;;  %v1616_v38 = vpack.c.bf16 %v363_v37, %v362_v36  ;;  %v553_v36 = vld [vmem:[%s2163_s4 + $0x70] sm:$0xff]  ;;  %v554_v37 = vld [vmem:[%s2163_s4 + $0x78] sm:$0xff]  ;;  %s1842_s4 = smov 96  }
  0x4a   :  { %1594 = vmatprep.subr.bf16.mxu1 %v1835_v0 }
  0x4b   :  { %1584 = vmatpush3.bf16.msra.mxu0 %v1583_v60  ;;  %v1631_v60 = vpack.c.bf16 %v453_v59, %v452_v58  ;;  %v1095_v58 = vld [vmem:[%s2164_s5] ss:$0 sm:$0xff] }
  0x4c   :  { %1585 = vmatprep.subr.bf16.mxu0 %v1835_v0 }
  0x4f   :  { %1587 = vmatpush3.bf16.msra.mxu0 %v1586_v63  ;;  %v1634_v63 = vpack.c.bf16 %v455_v62, %v454_v61  ;;  %v721_v62 = vld [vmem:[#allocation5 + $0x40] sm:$0xff] }
  0x50   :  { %1588 = vmatprep.subr.bf16.mxu0 %v1835_v0 }
  0x53   :  { %1590 = vmatpush3.bf16.msra.mxu0 %v1589_v4  ;;  %v1637_v4 = vpack.c.bf16 %v457_v3, %v456_v2 }
  0x54   :  { %1591 = vmatprep.subr.bf16.mxu0 %v1835_v0 }
  0x57   :  { %1593 = vmatpush3.bf16.msra.mxu0 %v1592_v7  ;;  %v1640_v7 = vpack.c.bf16 %v459_v6, %v458_v5  ;;  %v724_v5 = vld [vmem:[#allocation5 + $0x58] sm:$0xff] }
  0x58   :  { %1618 = vmatprep.subr.bf16.mxu0 %v1835_v0 }
 0x10c   :  { %v148_v40 = vpop.f32.mrb[0].mxu0 }
 0x10d   :  { %v149_v41 = vadd.f32 %v1089_v39, %v148_v40  ;;  %v1263_v42 = vpop.f32.mrb[1].mxu0  ;;  %v1092_v39 = vld [vmem:[%s2162_s3 + $0x2] ss:$0 sm:$0xff] }
 0x10f   :  { %1739 = vtanh.f32 %v149_v41 }
 0x119   :  { %v1740_v43 = vpop.eup %1739 }
 0x11a   :  { %153 = vrot.lane.b32.xlu0 %v1740_v43, %s1838_s16 }
 0x18c   :  { %v154_v44 = vpop.permute.xlu0 %153 }
 0x18d   :  { %v155_v45 = vmax.f32 %v1740_v43, %v154_v44 }
 0x18f   :  { %1297 = vmatmul.mubr.f32.vlgmr.msra.gmra.mrb[0].mxu1 %v155_v45 }
 0x190   :  { %1366 = vmatprep.mubr.msk.f32.mxu1 %vm1836_vm0, %v1837_v1  ;;  %1596 = vmatpush3.bf16.msra.mxu1 %v1595_v18  ;;  %v1643_v18 = vpack.c.bf16 %v540_v16, %v539_v15  ;;  %v1096_v16 = vld [vmem:[%s2166_s7] ss:$0 sm:$0xff] }
 0x191   :  { %1597 = vmatprep.subr.bf16.mxu1 %v1835_v0 }
 0x194   :  { %1599 = vmatpush3.bf16.msra.mxu1 %v1598_v20  ;;  %v1646_v20 = vpack.c.bf16 %v542_v19, %v541_v17 }
 0x195   :  { %1600 = vmatprep.subr.bf16.mxu1 %v1835_v0 }
 0x198   :  { %1602 = vmatpush3.bf16.msra.mxu1 %v1601_v23  ;;  %v1649_v23 = vpack.c.bf16 %v544_v22, %v543_v21  ;;  %v811_v21 = vld [vmem:[#allocation5 + $0x90] sm:$0xff]  ;;  %v812_v22 = vld [vmem:[#allocation5 + $0x98] sm:$0xff] }
 0x199   :  { %1603 = vmatprep.subr.bf16.mxu1 %v1835_v0 }
 0x19c   :  { %1605 = vmatpush3.bf16.msra.mxu1 %v1604_v26  ;;  %v1652_v26 = vpack.c.bf16 %v546_v25, %v545_v24  ;;  %v813_v24 = vld [vmem:[#allocation5 + $0xa0] sm:$0xff]  ;;  %v814_v25 = vld [vmem:[#allocation5 + $0xa8] sm:$0xff] }
 0x19d   :  { %1606 = vmatprep.subr.bf16.mxu1 %v1835_v0 }
 0x1a0   :  { %1608 = vmatpush3.bf16.msra.mxu1 %v1607_v29  ;;  %v1655_v29 = vpack.c.bf16 %v548_v28, %v547_v27  ;;  %v815_v27 = vld [vmem:[#allocation5 + $0xb0] sm:$0xff]  ;;  %v816_v28 = vld [vmem:[#allocation5 + $0xb8] sm:$0xff] }
 0x1a1   :  { %1609 = vmatprep.subr.bf16.mxu1 %v1835_v0 }
 0x1a4   :  { %1611 = vmatpush3.bf16.msra.mxu1 %v1610_v32  ;;  %v1658_v32 = vpack.c.bf16 %v550_v31, %v549_v30  ;;  %v897_v30 = vld [vmem:[#allocation5 + $0xc0] sm:$0xff]  ;;  %v898_v31 = vld [vmem:[#allocation5 + $0xc8] sm:$0xff] }
 0x1a5   :  { %1612 = vmatprep.subr.bf16.mxu1 %v1835_v0 }
 0x1a8   :  { %1614 = vmatpush3.bf16.msra.mxu1 %v1613_v35  ;;  %v1661_v35 = vpack.c.bf16 %v552_v34, %v551_v33  ;;  %v1098_v33 = vld [vmem:[%s2166_s7 + $0x1] ss:$0 sm:$0xff] }
 0x1a9   :  { %1615 = vmatprep.subr.bf16.mxu1 %v1835_v0 }
 0x1ac   :  { %1617 = vmatpush3.bf16.msra.mxu1 %v1616_v38  ;;  %v1664_v38 = vpack.c.bf16 %v554_v37, %v553_v36 }
 0x1ad   :  { %1642 = vmatprep.subr.bf16.mxu1 %v1835_v0 }
 0x262   :  { %v243_v9 = vpop.f32.mrb[0].mxu1 }
 0x263   :  { %v244_v10 = vadd.f32 %v1091_v8, %v243_v9  ;;  %v1298_v11 = vpop.f32.mrb[1].mxu1  ;;  %v1093_v8 = vld [vmem:[%s2162_s3 + $0x3] ss:$0 sm:$0xff] }
 0x265   :  { %1741 = vtanh.f32 %v244_v10 }
 0x26f   :  { %v1742_v12 = vpop.eup %1741 }
 0x270   :  { %248 = vrot.lane.b32.xlu0 %v1742_v12, %s1839_s14 }
 0x2e2   :  { %v249_v13 = vpop.permute.xlu0 %248 }
 0x2e3   :  { %v250_v14 = vmax.f32 %v1742_v12, %v249_v13 }
 0x2e5   :  { %1332 = vmatmul.mubr.f32.vlgmr.msra.gmra.mrb[2].mxu0 %v250_v14 }
 0x2e6   :  { %1401 = vmatprep.mubr.msk.f32.mxu0 %vm1836_vm0, %v1837_v1  ;;  %1620 = vmatpush3.bf16.msra.mxu0 %v1619_v49  ;;  %v635_v49 = vld [vmem:[#allocation5 + $0x10] sm:$0xff] }
 0x2e7   :  { %1621 = vmatprep.subr.bf16.mxu0 %v1835_v0 }
 0x2ea   :  { %1623 = vmatpush3.bf16.msra.mxu0 %v1622_v51  ;;  %v1670_v51 = vpack.c.bf16 %v636_v50, %v635_v49  ;;  %v1100_v49 = vld [vmem:[%s2166_s7 + $0x2] ss:$0 sm:$0xff] }
 0x2eb   :  { %1624 = vmatprep.subr.bf16.mxu0 %v1835_v0 }
 0x2ee   :  { %1626 = vmatpush3.bf16.msra.mxu0 %v1625_v54  ;;  %v1673_v54 = vpack.c.bf16 %v638_v53, %v637_v52 }
 0x2ef   :  { %1627 = vmatprep.subr.bf16.mxu0 %v1835_v0 }
 0x2f2   :  { %1629 = vmatpush3.bf16.msra.mxu0 %v1628_v57  ;;  %v1676_v57 = vpack.c.bf16 %v640_v56, %v639_v55  ;;  %v987_v55 = vld [vmem:[%s2167_s8 + $0x18] sm:$0xff] }
 0x2f3   :  { %1630 = vmatprep.subr.bf16.mxu0 %v1835_v0 }
 0x2f6   :  { %1632 = vmatpush3.bf16.msra.mxu0 %v1631_v60 }
 0x2f7   :  { %1633 = vmatprep.subr.bf16.mxu0 %v1835_v0 }
 0x2fa   :  { %1635 = vmatpush3.bf16.msra.mxu0 %v1634_v63  ;;  %v722_v63 = vld [vmem:[#allocation5 + $0x48] sm:$0xff] }
 0x2fb   :  { %1636 = vmatprep.subr.bf16.mxu0 %v1835_v0  ;;  %v1679_v2 = vpack.c.bf16 %v722_v63, %v721_v62  ;;  %v1102_v63 = vld [vmem:[%s2166_s7 + $0x3] ss:$0 sm:$0xff] }
 0x2fe   :  { %1638 = vmatpush3.bf16.msra.mxu0 %v1637_v4  ;;  %v723_v4 = vld [vmem:[#allocation5 + $0x50] sm:$0xff] }
 0x2ff   :  { %1639 = vmatprep.subr.bf16.mxu0 %v1835_v0  ;;  %v1682_v6 = vpack.c.bf16 %v724_v5, %v723_v4 }
 0x302   :  { %1641 = vmatpush3.bf16.msra.mxu0 %v1640_v7  ;;  %v725_v7 = vld [vmem:[#allocation5 + $0x60] sm:$0xff] }
 0x303   :  { %1666 = vmatprep.subr.bf16.mxu0 %v1835_v0 }
 0x3b8   :  { %v339_v40 = vpop.f32.mrb[2].mxu0 }
 0x3b9   :  { %v340_v41 = vadd.f32 %v1092_v39, %v339_v40  ;;  %v1333_v42 = vpop.f32.mrb[3].mxu0  ;;  %v1094_v39 = vld [vmem:[%s2162_s3 + $0x4] ss:$0 sm:$0xff] }
 0x3bb   :  { %1743 = vtanh.f32 %v340_v41 }
 0x3c5   :  { %v1744_v43 = vpop.eup %1743 }
 0x3c6   :  { %344 = vrot.lane.b32.xlu1 %v1744_v43, %s1840_s6 }
 0x438   :  { %v345_v44 = vpop.permute.xlu1 %344 }
 0x439   :  { %v346_v45 = vmax.f32 %v1744_v43, %v345_v44  ;;  %v633_v43 = vld [vmem:[#allocation5] sm:$0xff]  ;;  %v634_v44 = vld [vmem:[#allocation5 + $0x8] sm:$0xff] }
 0x43b   :  { %1367 = vmatmul.mubr.f32.vlgmr.msra.gmra.mrb[2].mxu1 %v346_v45  ;;  %v1667_v45 = vpack.c.bf16 %v634_v44, %v633_v43  ;;  %v903_v44 = vld [vmem:[#allocation5 + $0xf0] sm:$0xff] }
 0x43c   :  { %1436 = vmatprep.mubr.msk.f32.mxu1 %vm1836_vm0, %v1837_v1  ;;  %1644 = vmatpush3.bf16.msra.mxu1 %v1643_v18 }
 0x43d   :  { %1645 = vmatprep.subr.bf16.mxu1 %v1835_v0 }
 0x440   :  { %1647 = vmatpush3.bf16.msra.mxu1 %v1646_v20 }
 0x441   :  { %1648 = vmatprep.subr.bf16.mxu1 %v1835_v0 }
 0x444   :  { %1650 = vmatpush3.bf16.msra.mxu1 %v1649_v23  ;;  %v1694_v23 = vpack.c.bf16 %v812_v22, %v811_v21 }
 0x445   :  { %1651 = vmatprep.subr.bf16.mxu1 %v1835_v0 }
 0x448   :  { %1653 = vmatpush3.bf16.msra.mxu1 %v1652_v26  ;;  %v1697_v26 = vpack.c.bf16 %v814_v25, %v813_v24 }
 0x449   :  { %1654 = vmatprep.subr.bf16.mxu1 %v1835_v0 }
 0x44c   :  { %1656 = vmatpush3.bf16.msra.mxu1 %v1655_v29  ;;  %v1700_v29 = vpack.c.bf16 %v816_v28, %v815_v27 }
 0x44d   :  { %1657 = vmatprep.subr.bf16.mxu1 %v1835_v0 }
 0x450   :  { %1659 = vmatpush3.bf16.msra.mxu1 %v1658_v32  ;;  %v1703_v32 = vpack.c.bf16 %v898_v31, %v897_v30 }
 0x451   :  { %1660 = vmatprep.subr.bf16.mxu1 %v1835_v0 }
 0x454   :  { %1662 = vmatpush3.bf16.msra.mxu1 %v1661_v35 }
 0x455   :  { %1663 = vmatprep.subr.bf16.mxu1 %v1835_v0 }
 0x458   :  { %1665 = vmatpush3.bf16.msra.mxu1 %v1664_v38  ;;  %v899_v38 = vld [vmem:[#allocation5 + $0xd0] sm:$0xff] }
 0x459   :  { %1690 = vmatprep.subr.bf16.mxu1 %v1835_v0 }
 0x50e   :  { %v435_v9 = vpop.f32.mrb[2].mxu1 }
 0x50f   :  { %v436_v10 = vadd.f32 %v1093_v8, %v435_v9  ;;  %v1368_v11 = vpop.f32.mrb[3].mxu1  ;;  %v726_v8 = vld [vmem:[#allocation5 + $0x68] sm:$0xff] }
 0x510   :  { %v1685_v9 = vpack.c.bf16 %v726_v8, %v725_v7  ;;  %v728_v11 = vld [vmem:[#allocation5 + $0x78] sm:$0xff] }
 0x511   :  { %1745 = vtanh.f32 %v436_v10  ;;  %v727_v10 = vld [vmem:[#allocation5 + $0x70] sm:$0xff] }
 0x51b   :  { %v1746_v12 = vpop.eup %1745 }
 0x51c   :  { %440 = vrot.lane.b32.xlu1 %v1746_v12, %s1841_s22 }
 0x58e   :  { %v441_v13 = vpop.permute.xlu1 %440 }
 0x58f   :  { %v442_v14 = vmax.f32 %v1746_v12, %v441_v13  ;;  %v1688_v12 = vpack.c.bf16 %v728_v11, %v727_v10  ;;  %v809_v13 = vld [vmem:[#allocation5 + $0x80] sm:$0xff] }
 0x591   :  { %1402 = vmatmul.mubr.f32.vlgmr.msra.gmra.mrb[4].mxu0 %v442_v14  ;;  %v810_v14 = vld [vmem:[#allocation5 + $0x88] sm:$0xff] }
 0x592   :  { %1455 = vmatprep.mubr.msk.f32.mxu0 %vm1836_vm0, %v1837_v1  ;;  %1668 = vmatpush3.bf16.msra.mxu0 %v1667_v45  ;;  %v1691_v15 = vpack.c.bf16 %v810_v14, %v809_v13  ;;  %v904_v45 = vld [vmem:[#allocation5 + $0xf8] sm:$0xff] }
 0x593   :  { %1669 = vmatprep.subr.bf16.mxu0 %v1835_v0 }
 0x596   :  { %1671 = vmatpush3.bf16.msra.mxu0 %v1670_v51 }
 0x597   :  { %1672 = vmatprep.subr.bf16.mxu0 %v1835_v0 }
 0x59a   :  { %1674 = vmatpush3.bf16.msra.mxu0 %v1673_v54  ;;  %v986_v54 = vld [vmem:[%s2167_s8 + $0x10] sm:$0xff] }
 0x59b   :  { %1675 = vmatprep.subr.bf16.mxu0 %v1835_v0  ;;  %v1718_v56 = vpack.c.bf16 %v987_v55, %v986_v54 }
 0x59e   :  { %1677 = vmatpush3.bf16.msra.mxu0 %v1676_v57  ;;  %v988_v57 = vld [vmem:[%s2167_s8 + $0x20] sm:$0xff] }
 0x59f   :  { %1678 = vmatprep.subr.bf16.mxu0 %v1835_v0 }
 0x664   :  { %v531_v40 = vpop.f32.mrb[4].mxu0 }
 0x665   :  { %v532_v41 = vadd.f32 %v1094_v39, %v531_v40  ;;  %v1403_v42 = vpop.f32.mrb[5].mxu0  ;;  %v900_v39 = vld [vmem:[#allocation5 + $0xd8] sm:$0xff] }
 0x666   :  { %v1706_v40 = vpack.c.bf16 %v900_v39, %v899_v38  ;;  %v902_v42 = vld [vmem:[#allocation5 + $0xe8] sm:$0xff] }
 0x667   :  { %1747 = vtanh.f32 %v532_v41  ;;  %v901_v41 = vld [vmem:[#allocation5 + $0xe0] sm:$0xff] }
 0x668   :  { %v1709_v43 = vpack.c.bf16 %v902_v42, %v901_v41 }
 0x671   :  { %v1748_v46 = vpop.eup %1747 }
 0x672   :  { %536 = vrot.lane.b32.xlu0 %v1748_v46, %s1842_s4 }
 0x6e4   :  { %v537_v47 = vpop.permute.xlu0 %536 }
 0x6e5   :  { %v538_v48 = vmax.f32 %v1748_v46, %v537_v47  ;;  %v1712_v46 = vpack.c.bf16 %v904_v45, %v903_v44  ;;  %v985_v47 = vld [vmem:[%s2167_s8 + $0x8] sm:$0xff] }
 0x6e7   :  { %1437 = vmatmul.mubr.f32.vlgmr.msra.gmra.mrb[4].mxu1 %v538_v48 }
 0x6e8   :  { %1493 = vmatprep.mubr.msk.f32.mxu1 %vm1836_vm0, %v1837_v1  ;;  %1692 = vmatpush3.bf16.msra.mxu1 %v1691_v15 }
 0x6e9   :  { %1693 = vmatprep.subr.bf16.mxu1 %v1835_v0 }
 0x6ec   :  { %1695 = vmatpush3.bf16.msra.mxu1 %v1694_v23 }
 0x6ed   :  { %1696 = vmatprep.subr.bf16.mxu1 %v1835_v0 }
 0x6f0   :  { %1698 = vmatpush3.bf16.msra.mxu1 %v1697_v26 }
 0x6f1   :  { %1699 = vmatprep.subr.bf16.mxu1 %v1835_v0 }
 0x6f4   :  { %1701 = vmatpush3.bf16.msra.mxu1 %v1700_v29 }
 0x6f5   :  { %1714 = vmatprep.subr.bf16.mxu1 %v1835_v0 }
 0x7ba   :  { %v628_v59 = vpop.f32.mrb[4].mxu1 }
 0x7bb   :  { %v629_v60 = vadd.f32 %v1095_v58, %v628_v59  ;;  %v1438_v61 = vpop.f32.mrb[5].mxu1  ;;  %v989_v58 = vld [vmem:[%s2167_s8 + $0x28] sm:$0xff] }
 0x7bc   :  { %v1721_v59 = vpack.c.bf16 %v989_v58, %v988_v57  ;;  %v991_v61 = vld [vmem:[%s2167_s8 + $0x38] sm:$0xff] }
 0x7bd   :  { %1749 = vtanh.f32 %v629_v60  ;;  %v990_v60 = vld [vmem:[%s2167_s8 + $0x30] sm:$0xff] }
 0x7be   :  { %v1724_v62 = vpack.c.bf16 %v991_v61, %v990_v60 }
 0x7c7   :  { %v1750_v3 = vpop.eup %1749 }
 0x7c8   :  { %1456 = vmatmul.mubr.msk.f32.vlgmr.msra.gmra.mrb[6].mxu0 %vm78_vm1, %v1750_v3 }
 0x7c9   :  { %1680 = vmatpush3.bf16.msra.mxu0 %v1679_v2  ;;  %1474 = vmatprep.mubr.msk.f32.mxu0 %vm1836_vm0, %v1837_v1 }
 0x7ca   :  { %1681 = vmatprep.subr.bf16.mxu0 %v1835_v0 }
 0x7cd   :  { %1683 = vmatpush3.bf16.msra.mxu0 %v1682_v6  ;;  %v1104_v6 = vld [vmem:[%s2168_s9] ss:$0 sm:$0xff] }
 0x7ce   :  { %1684 = vmatprep.subr.bf16.mxu0 %v1835_v0 }
 0x7d1   :  { %1686 = vmatpush3.bf16.msra.mxu0 %v1685_v9 }
 0x7d2   :  { %1687 = vmatprep.subr.bf16.mxu0 %v1835_v0 }
 0x7d5   :  { %1689 = vmatpush3.bf16.msra.mxu0 %v1688_v12 }
 0x7d6   :  { %1702 = vmatprep.subr.bf16.mxu0 %v1835_v0 }
 0x89b   :  { %v715_v17 = vpop.f32.mrb[6].mxu0 }
 0x89c   :  { %v716_v18 = vadd.f32 %v1096_v16, %v715_v17  ;;  %v1457_v19 = vpop.f32.mrb[7].mxu0 }
 0x89e   :  { %1751 = vtanh.f32 %v716_v18 }
 0x8a8   :  { %v1752_v20 = vpop.eup %1751 }
 0x8a9   :  { %1475 = vmatmul.mubr.msk.f32.vlgmr.msra.gmra.mrb[8].mxu0 %vm78_vm1, %v1752_v20 }
 0x8aa   :  { %1512 = vmatprep.mubr.msk.f32.mxu0 %vm1836_vm0, %v1837_v1  ;;  %1704 = vmatpush3.bf16.msra.mxu0 %v1703_v32 }
 0x8ab   :  { %1705 = vmatprep.subr.bf16.mxu0 %v1835_v0 }
 0x8ae   :  { %1707 = vmatpush3.bf16.msra.mxu0 %v1706_v40 }
 0x8af   :  { %1708 = vmatprep.subr.bf16.mxu0 %v1835_v0 }
 0x8b2   :  { %1710 = vmatpush3.bf16.msra.mxu0 %v1709_v43 }
 0x8b3   :  { %1711 = vmatprep.subr.bf16.mxu0 %v1835_v0 }
 0x8b6   :  { %1713 = vmatpush3.bf16.msra.mxu0 %v1712_v46 }
 0x97c   :  { %v803_v34 = vpop.f32.mrb[8].mxu0 }
 0x97d   :  { %v804_v35 = vadd.f32 %v1098_v33, %v803_v34  ;;  %v1476_v36 = vpop.f32.mrb[9].mxu0 }
 0x97f   :  { %1753 = vtanh.f32 %v804_v35 }
 0x989   :  { %v1754_v37 = vpop.eup %1753 }
 0x98a   :  { %1494 = vmatmul.mubr.msk.f32.vlgmr.msra.gmra.mrb[6].mxu1 %vm78_vm1, %v1754_v37 }
 0x98b   :  { %1531 = vmatprep.mubr.msk.f32.mxu1 %vm1836_vm0, %v1837_v1  ;;  %v984_v1 = vld [vmem:[%s2167_s8] sm:$0xff]  ;;  %s1843_s8 = smov [#allocation7]  }
 0x98c   :  { %v1715_v48 = vpack.c.bf16 %v985_v47, %v984_v1  ;;  %s1079_s13 = sshll.u32 %s1843_s8, 4  ;;  %s1080_s13 = int_to_ptr.vmem [resolvable:$true] %s1079_s13 }
 0x98d   :  { %s1803_s5 = scalar_lea.vmem %s1080_s13, 32  ;;  %p1808_p3 = scmp.lt.s32.totalorder %s1080_s13, %s1080_s13 }
 0x98e   :  { %1716 = vmatpush3.bf16.msra.mxu1 %v1715_v48  ;;  %p1804_p2 = scmp.ne.s32.totalorder %s1080_s13, %s1803_s5  ;;  %p1809_p4 = scmp.lt.s32.totalorder %s1803_s5, %s1803_s5 }
 0x98f   :  { %1717 = vmatprep.subr.bf16.mxu1 %v1835_v0 }
 0x990   :  { %p1810_p5 = por %p1809_p4, %p1808_p3 }
 0x992   :  { %1719 = vmatpush3.bf16.msra.mxu1 %v1718_v56  ;;  %p1811_p6 = pnand %p1810_p5, %p1804_p2 }
 0x993   :  { %1720 = vmatprep.subr.bf16.mxu1 %v1835_v0 }
 0x996   :  { %1722 = vmatpush3.bf16.msra.mxu1 %v1721_v59 }
 0x997   :  { %1723 = vmatprep.subr.bf16.mxu1 %v1835_v0 }
 0x99a   :  { %1725 = vmatpush3.bf16.msra.mxu1 %v1724_v62 }
 0xa5d   :  { %v891_v50 = vpop.f32.mrb[6].mxu1 }
 0xa5e   :  { %v892_v51 = vadd.f32 %v1100_v49, %v891_v50  ;;  %v1495_v52 = vpop.f32.mrb[7].mxu1 }
 0xa60   :  { %1755 = vtanh.f32 %v892_v51 }
 0xa6a   :  { %v1756_v53 = vpop.eup %1755 }
 0xa6b   :  { %1513 = vmatmul.mubr.msk.f32.vlgmr.msra.gmra.mrb[10].mxu0 %vm78_vm1, %v1756_v53 }
 0xb3e   :  { %v979_v2 = vpop.f32.mrb[10].mxu0 }
 0xb3f   :  { %v980_v3 = vadd.f32 %v1102_v63, %v979_v2  ;;  %v1514_v4 = vpop.f32.mrb[11].mxu0 }
 0xb41   :  { %1757 = vtanh.f32 %v980_v3 }
 0xb4b   :  { %v1758_v5 = vpop.eup %1757 }
 0xb4c   :  { %1532 = vmatmul.mubr.msk.f32.vlgmr.msra.gmra.mrb[8].mxu1 %vm78_vm1, %v1758_v5 }
 0xc1f   :  { %v1068_v7 = vpop.f32.mrb[8].mxu1 }
 0xc20   :  { %v1069_v0 = vadd.f32 %v1104_v6, %v1068_v7  ;;  %v1533_v8 = vpop.f32.mrb[9].mxu1 }
 0xc22   :  { %1072 = vst [vmem:[#allocation7] sm:$0x3] %v1069_v0 }
 0xc23   :  { %1814 = shalt.err (!%p1811_p6)
}
 0xc24   :  { %s1815_s0 = scalar_lea.hbm %s2169_s10, 32 }
 0xc25   :  { %p1816_p7 = scmp.ne.s32.totalorder %s2169_s10, %s1815_s0  ;;  %p1819_p8 = scmp.lt.u32.totalorder %s1815_s0, %s2169_s10 }
 0xc27   :  { %p1821_p9 = pnand %p1819_p8, %p1816_p7 }
 0xc29   :  { %1824 = shalt.err (!%p1821_p9)
}
 0xc2a   :  { %1082 = dma.vmem_to_hbm [thread:$0]  %s1080_s13, 32, %s2169_s10, [#allocation4]  }
 0xc2b   :  { %1829 = dma.done.wait [#allocation4], 32  }
 0xc2c   :  { %1830 = vsyncadd [#allocation4], 4294967264 }
 0xc2d   :  { %1086 = vsyncpa [#allocation3], 1 }
 0xc2e   :  { %1087 = vsyncpa [#allocation6], 1 }
 0xc2f   :  { %1088 = vsyncpa [#allocation4], 1 }

</bundles_post_ra>
